<compile_context>
chip_gen: v6e
topology: v6e:2x2x1
jax: 0.10.0
libtpu: 0.0.40
codegen_flags: <defaults>
</compile_context>

<pallas_src>
import functools

import jax
import jax.numpy as jnp
from jax import lax
from jax.experimental import pallas as pl
from jax.experimental.pallas import tpu as pltpu


def _baseconv_kernel(x_ref, w_ref, m_ref, o_ref, *, W, K):
    """One batch chunk of  y = SiLU(conv_KxK(x) with inference BN folded in).

    x_ref: (Cin_p, L)               L = Nb*H*W lane-flattened pixels (batch-major)
    w_ref: (Cout_p, K*K*Cin_p + 1)  folded conv weight; last column = BN bias
    m_ref: (K*K*Cin_p + 1, L)       0/1 zero-padding masks (last row = 1 → bias)
    o_ref: (Cout_p, L)
    """
    L = x_ref.shape[1]
    x = x_ref[...]
    r = (K - 1) // 2

    taps = []
    for dy in range(-r, r + 1):
        for dx in range(-r, r + 1):
            d = dy * W + dx
            # tap[:, p] = x[:, p + d] (circular over the lane axis); the
            # precomputed mask restores zero padding at image borders and kills
            # any cross-image / wrap-around contamination.
            taps.append(x if d == 0 else pltpu.roll(x, shift=(-d) % L, axis=1))
    taps.append(jnp.ones((1, L), x.dtype))        # constant-1 "tap" → bias column

    stacked = jnp.concatenate(taps, axis=0) * m_ref[...]
    # TODO(synk): for realistic channel counts on v6e/v7x, cast `stacked` and the
    # weight slab to bf16 here (keep preferred_element_type=f32); f32 is fine
    # while the MXU is idle at these tiny shapes and keeps the test tolerance.
    y = jnp.dot(w_ref[...], stacked, preferred_element_type=jnp.float32)
    o_ref[...] = (y * jax.nn.sigmoid(y)).astype(o_ref.dtype)     # SiLU


def _round_up(v, m):
    return (v + m - 1) // m * m


def _pick_nb(n, per_image_bytes, budget_bytes=8 << 20):
    """Largest divisor of n whose per-step footprint stays under the VMEM budget."""
    nb = 1
    for cand in range(1, n + 1):
        if n % cand == 0 and cand * per_image_bytes <= budget_bytes:
            nb = cand
    return nb


def baseconv_pallas(x_nchw, conv_weight_oihw, bn_gamma, bn_beta, bn_mean,
                    bn_var, *, eps=1e-3):
    """SiLU(BatchNorm2d(Conv2d(x, stride=1, pad=(k-1)//2, bias=False))) — BaseConv.forward, eval mode."""
    # TODO(synk): stride > 1 and groups > 1 (DWConv-style BaseConv) are not
    # implemented in this Pallas path.
    N, Cin, H, W = x_nchw.shape
    Cout, Cin_w, K, K2 = conv_weight_oihw.shape
    assert Cin_w == Cin and K == K2 and K % 2 == 1
    HW = H * W
    assert HW % 128 == 0, "lane axis (H*W) must be a multiple of 128"
    # TODO(synk): large images need an HW-tiled grid with halo DMA — the circular
    # roll + mask trick only works while H*W is one un-tiled lane axis.

    cin_p = _round_up(Cin, 8)
    cout_p = _round_up(Cout, 8)
    mrows = K * K * cin_p + 1                     # stacked taps + constant-1 row

    # ---- Fold inference-mode BN into the conv (in f32): w' = w*s, b' = beta - mean*s.
    f32 = jnp.float32
    s = bn_gamma.astype(f32) / jnp.sqrt(bn_var.astype(f32) + eps)           # (Cout,)
    wf = conv_weight_oihw.astype(f32) * s[:, None, None, None]              # (Cout,Cin,K,K)
    bias = bn_beta.astype(f32) - bn_mean.astype(f32) * s                    # (Cout,)

    # Single 2D weight slab (Cout_p, K*K*Cin_p + 1): columns are tap-major /
    # in-channel-minor, matching the kernel's stacked operand; last column = bias.
    w_k = jnp.transpose(wf, (2, 3, 0, 1)).reshape(K * K, Cout, Cin)
    w_pad = jnp.zeros((K * K, cout_p, cin_p), f32).at[:, :Cout, :Cin].set(w_k)
    w2d = jnp.transpose(w_pad, (1, 0, 2)).reshape(cout_p, K * K * cin_p)
    b_col = jnp.zeros((cout_p, 1), f32).at[:Cout, 0].set(bias)
    w_full = jnp.concatenate([w2d, b_col], axis=1)                          # (Cout_p, mrows)

    # ---- Batch chunk size: pack images onto the lane axis (fills lanes, cuts
    # grid-step overhead) while staying well inside scoped VMEM (v7x: 64 MiB phys).
    per_image = HW * 4 * (2 * cin_p + 2 * cout_p + 2 * mrows)
    nb = _pick_nb(N, per_image)
    L = nb * HW

    # ---- Batch-invariant zero-padding masks, built once (grid-constant input).
    r = (K - 1) // 2
    rows = jnp.arange(H, dtype=jnp.int32)[:, None]
    cols = jnp.arange(W, dtype=jnp.int32)[None, :]
    mask_rows = []
    for dy in range(-r, r + 1):
        for dx in range(-r, r + 1):
            v = ((rows + dy >= 0) & (rows + dy < H) &
                 (cols + dx >= 0) & (cols + dx < W)).reshape(1, HW)
            v = jnp.tile(v, (1, nb))                                        # (1, L)
            mask_rows.append(jnp.broadcast_to(v, (cin_p, L)))
    mask_rows.append(jnp.ones((1, L), bool))                                # bias row
    mask = jnp.concatenate(mask_rows, axis=0).astype(f32)                   # (mrows, L)

    # ---- Activations: (N, Cin, H, W) -> (Cin_p, N*H*W); channels on sublanes
    # (zero-padded to 8), batch-major flattened pixels on lanes (lane-dense).
    x_lane = jnp.transpose(x_nchw.astype(f32), (1, 0, 2, 3)).reshape(Cin, N * HW)
    x_lane = jnp.pad(x_lane, ((0, cin_p - Cin), (0, 0)))

    kernel = functools.partial(_baseconv_kernel, W=W, K=K)
    grid_spec = pltpu.PrefetchScalarGridSpec(
        num_scalar_prefetch=0,
        grid=(N // nb,),
        in_specs=[
            pl.BlockSpec((cin_p, L), lambda n: (0, n)),
            pl.BlockSpec((cout_p, mrows), lambda n: (0, 0)),   # resident weight
            pl.BlockSpec((mrows, L), lambda n: (0, 0)),        # resident masks
        ],
        out_specs=pl.BlockSpec((cout_p, L), lambda n: (0, n)),
    )

    y_lane = pl.pallas_call(
        kernel,
        out_shape=jax.ShapeDtypeStruct((cout_p, N * HW), x_nchw.dtype),
        grid_spec=grid_spec,
        compiler_params=pltpu.CompilerParams(
            dimension_semantics=("parallel",)),   # shard batch chunks over v7x TCs
    )(x_lane, w_full, mask)

    # (Cout_p, N*H*W) -> (N, Cout, H, W); drop the zero-padded output channels.
    return jnp.transpose(y_lane[:Cout].reshape(Cout, N, H, W), (1, 0, 2, 3))


def _reference_baseconv(x, conv_weight, gamma, beta, mean, var, eps=1e-3):
    """Pure-JAX (XLA) reference in PyTorch NCHW conventions, eval-mode BN."""
    dn = ('NCHW', 'OIHW', 'NCHW')
    y = lax.conv_general_dilated(x, conv_weight, (1, 1), 'SAME',
                                 dimension_numbers=dn)
    s = (gamma / jnp.sqrt(var + eps)).reshape(1, -1, 1, 1)
    b = (beta - mean * gamma / jnp.sqrt(var + eps)).reshape(1, -1, 1, 1)
    y = y * s + b
    return y * jax.nn.sigmoid(y)                            # SiLU


if __name__ == "__main__":
    # BaseConv(in_channels=4, out_channels=4, ksize=3, stride=1, act='silu')
    N, Cin, H, W = 2, 4, 16, 16
    Cout, K = 4, 3

    key = jax.random.PRNGKey(0)
    ks = jax.random.split(key, 6)

    x = jax.random.normal(ks[0], (N, Cin, H, W), jnp.float32)
    w = jax.random.normal(ks[1], (Cout, Cin, K, K), jnp.float32) * 0.2
    gamma = 1.0 + 0.1 * jax.random.normal(ks[2], (Cout,), jnp.float32)
    beta = 0.1 * jax.random.normal(ks[3], (Cout,), jnp.float32)
    mean = 0.1 * jax.random.normal(ks[4], (Cout,), jnp.float32)
    var = 1.0 + 0.1 * jnp.abs(jax.random.normal(ks[5], (Cout,), jnp.float32))

    y = baseconv_pallas(x, w, gamma, beta, mean, var)
    y = jax.block_until_ready(y)

    y_ref = _reference_baseconv(x, w, gamma, beta, mean, var)
    y_ref = jax.block_until_ready(y_ref)

    assert y.shape == (N, Cout, H, W)
    max_err = float(jnp.max(jnp.abs(y - y_ref)))
    assert jnp.allclose(y, y_ref, rtol=5e-4, atol=5e-4), max_err

    print("KERNEL_OK")
</pallas_src>

<mosaic_0001>
module attributes {stable_mosaic.version = 11 : i64} {
  func.func @_baseconv_kernel(%arg0: i32, %arg1: memref<8x512xf32, #tpu.memory_space<vmem>>, %arg2: memref<8x73xf32, #tpu.memory_space<vmem>>, %arg3: memref<73x512xf32, #tpu.memory_space<vmem>>, %arg4: memref<8x512xf32, #tpu.memory_space<vmem>>) attributes {dimension_semantics = [#tpu.dimension_semantics<parallel>], iteration_bounds = array<i64: 1>, scalar_prefetch = 0 : i64, scratch_operands = 0 : i64, tpu.core_type = #tpu.core_type<tc>, window_params = [{transform_indices = @transform_0, window_bounds = array<i64: 8, 512>}, {pipeline_mode = #tpu.pipeline_mode<synchronous>, transform_indices = @transform_1, window_bounds = array<i64: 8, 73>}, {pipeline_mode = #tpu.pipeline_mode<synchronous>, transform_indices = @transform_2, window_bounds = array<i64: 73, 512>}, {transform_indices = @transform_3, window_bounds = array<i64: 8, 512>}]} {
    %c0 = arith.constant 0 : index
    %c0_0 = arith.constant 0 : index
    %0 = vector.load %arg1[%c0, %c0_0] : memref<8x512xf32, #tpu.memory_space<vmem>>, vector<8x512xf32>
    %c17_i32 = arith.constant 17 : i32
    %1 = tpu.dynamic_rotate %0 by %c17_i32 dim 1 : vector<8x512xf32>, i32 -> vector<8x512xf32>
    %c16_i32 = arith.constant 16 : i32
    %2 = tpu.dynamic_rotate %0 by %c16_i32 dim 1 : vector<8x512xf32>, i32 -> vector<8x512xf32>
    %c15_i32 = arith.constant 15 : i32
    %3 = tpu.dynamic_rotate %0 by %c15_i32 dim 1 : vector<8x512xf32>, i32 -> vector<8x512xf32>
    %c1_i32 = arith.constant 1 : i32
    %4 = tpu.dynamic_rotate %0 by %c1_i32 dim 1 : vector<8x512xf32>, i32 -> vector<8x512xf32>
    %c511_i32 = arith.constant 511 : i32
    %5 = tpu.dynamic_rotate %0 by %c511_i32 dim 1 : vector<8x512xf32>, i32 -> vector<8x512xf32>
    %c497_i32 = arith.constant 497 : i32
    %6 = tpu.dynamic_rotate %0 by %c497_i32 dim 1 : vector<8x512xf32>, i32 -> vector<8x512xf32>
    %c496_i32 = arith.constant 496 : i32
    %7 = tpu.dynamic_rotate %0 by %c496_i32 dim 1 : vector<8x512xf32>, i32 -> vector<8x512xf32>
    %c495_i32 = arith.constant 495 : i32
    %8 = tpu.dynamic_rotate %0 by %c495_i32 dim 1 : vector<8x512xf32>, i32 -> vector<8x512xf32>
    %cst = arith.constant 1.000000e+00 : f32
    %9 = vector.broadcast %cst : f32 to vector<1x512xf32>
    %10 = tpu.concatenate %1, %2, %3, %4, %0, %5, %6, %7, %8, %9 in 0 : vector<8x512xf32>, vector<8x512xf32>, vector<8x512xf32>, vector<8x512xf32>, vector<8x512xf32>, vector<8x512xf32>, vector<8x512xf32>, vector<8x512xf32>, vector<8x512xf32>, vector<1x512xf32> -> vector<73x512xf32>
    %c0_1 = arith.constant 0 : index
    %c0_2 = arith.constant 0 : index
    %11 = vector.load %arg3[%c0_1, %c0_2] : memref<73x512xf32, #tpu.memory_space<vmem>>, vector<73x512xf32>
    %12 = arith.mulf %10, %11 : vector<73x512xf32>
    %c0_3 = arith.constant 0 : index
    %c0_4 = arith.constant 0 : index
    %13 = vector.load %arg2[%c0_3, %c0_4] : memref<8x73xf32, #tpu.memory_space<vmem>>, vector<8x73xf32>
    %cst_5 = arith.constant dense<0.000000e+00> : vector<8x512xf32>
    %14 = tpu.matmul %13, %12, %cst_5 {dimension_numbers = #tpu.dot_dimension_numbers<[1], [0], [0], [1], [0, 0, 1, 1], [], []>} : vector<8x73xf32>, vector<73x512xf32>, vector<8x512xf32> -> vector<8x512xf32>
    %15 = arith.negf %14 : vector<8x512xf32>
    %16 = math.exp %15 : vector<8x512xf32>
    %cst_6 = arith.constant 1.000000e+00 : f32
    %17 = vector.broadcast %cst_6 : f32 to vector<8x512xf32>
    %18 = arith.addf %17, %16 : vector<8x512xf32>
    %19 = arith.divf %17, %18 : vector<8x512xf32>
    %20 = arith.mulf %14, %19 : vector<8x512xf32>
    %c0_7 = arith.constant 0 : index
    %c0_8 = arith.constant 0 : index
    %21 = vector.load %arg4[%c0_7, %c0_8] : memref<8x512xf32, #tpu.memory_space<vmem>>, vector<8x512xf32>
    tpu.vector_store %arg4[%c0_7, %c0_8], %20 {strides = array<i32>} : memref<8x512xf32, #tpu.memory_space<vmem>>, vector<8x512xf32>,
    return
  }
  func.func @transform_0(%arg0: i32) -> (i32, i32) {
    %c0_i32 = arith.constant 0 : i32
    %c0_i32_0 = arith.constant 0 : i32
    return %c0_i32, %arg0 : i32, i32
  }
  func.func @transform_1(%arg0: i32) -> (i32, i32) {
    %c0_i32 = arith.constant 0 : i32
    %c0_i32_0 = arith.constant 0 : i32
    %c0_i32_1 = arith.constant 0 : i32
    return %c0_i32, %c0_i32_0 : i32, i32
  }
  func.func @transform_2(%arg0: i32) -> (i32, i32) {
    %c0_i32 = arith.constant 0 : i32
    %c0_i32_0 = arith.constant 0 : i32
    %c0_i32_1 = arith.constant 0 : i32
    return %c0_i32, %c0_i32_0 : i32, i32
  }
  func.func @transform_3(%arg0: i32) -> (i32, i32) {
    %c0_i32 = arith.constant 0 : i32
    %c0_i32_0 = arith.constant 0 : i32
    return %c0_i32, %arg0 : i32, i32
  }
}

</mosaic_0001>

<bundles_post_ra>
// kernel: tpu_custom_call.1
= control target key start
LH: loop header
LB: loop body
LE: loop exit
PB: predicated region body
PF: predicated region fallthrough
CT: control target
= control target key end

     0   :  { %8 = vsyncpa [#allocation3], 0  ;;  %s714_s0 = inlined_call_operand.hbm [shape: f32[8,512], index: 0, kind: input, shape index: {}]   ;;  %s715_s1 = inlined_call_operand.hbm [shape: f32[8,73], index: 1, kind: input, shape index: {}]   ;;  %s716_s2 = inlined_call_operand.hbm [shape: f32[73,512], index: 2, kind: input, shape index: {}]   ;;  %s717_s3 = inlined_call_operand.hbm [shape: f32[8,512], index: 3, kind: output, shape index: {}]  }
   0x1   :  { %9 = vsyncpa [#allocation6], 0 }
   0x2   :  { %10 = vsyncpa [#allocation4], 0  ;;  %s573_s12 = smov [#allocation5]   ;;  %s574_s14 = smov [#allocation2]  }
   0x3   :  { %s27_s13 = sshll.u32 %s573_s12, 4  ;;  %s17_s15 = sshll.u32 %s574_s14, 4  ;;  %s28_s13 = int_to_ptr.vmem [resolvable:$true] %s27_s13  ;;  %s18_s15 = int_to_ptr.vmem [resolvable:$true] %s17_s15 }
   0x4   :  { %s495_s16 = scalar_lea.vmem %s28_s13, 128  ;;  %p500_p1 = scmp.lt.s32.totalorder %s28_s13, %s28_s13 }
   0x5   :  { %p496_p0 = scmp.ne.s32.totalorder %s28_s13, %s495_s16  ;;  %p501_p2 = scmp.lt.s32.totalorder %s495_s16, %s495_s16 }
   0x7   :  { %p502_p3 = por %p501_p2, %p500_p1 }
   0x9   :  { %p503_p4 = pnand %p502_p3, %p496_p0 }
   0xb   :  { %506 = shalt.err (!%p503_p4)
}
   0xc   :  { %30 = dma.hbm_to_vmem [thread:$0]  %s715_s1, 128, %s28_s13, [#allocation6]  }
   0xd   :  { %s515_s19 = scalar_lea.vmem %s18_s15, 512  ;;  %p520_p6 = scmp.lt.s32.totalorder %s18_s15, %s18_s15 }
   0xe   :  { %p516_p5 = scmp.ne.s32.totalorder %s18_s15, %s515_s19  ;;  %p521_p7 = scmp.lt.s32.totalorder %s515_s19, %s515_s19 }
  0x10   :  { %p522_p8 = por %p521_p7, %p520_p6 }
  0x12   :  { %p523_p9 = pnand %p522_p8, %p516_p5 }
  0x14   :  { %526 = shalt.err (!%p523_p9)
}
  0x15   :  { %20 = dma.hbm_to_vmem [thread:$0]  %s714_s0, 512, %s18_s15, [#allocation3]  }
  0x16   :  { %s575_s22 = smov [#allocation7]  }
  0x17   :  { %s36_s23 = sshll.u32 %s575_s22, 4  ;;  %s37_s23 = int_to_ptr.vmem [resolvable:$true] %s36_s23 }
  0x18   :  { %s535_s24 = scalar_lea.vmem %s37_s23, 5120  ;;  %p540_p11 = scmp.lt.s32.totalorder %s37_s23, %s37_s23 }
  0x19   :  { %p536_p10 = scmp.ne.s32.totalorder %s37_s23, %s535_s24  ;;  %p541_p12 = scmp.lt.s32.totalorder %s535_s24, %s535_s24 }
  0x1b   :  { %p542_p13 = por %p541_p12, %p540_p11 }
  0x1d   :  { %p543_p0 = pnand %p542_p13, %p536_p10 }
  0x1f   :  { %546 = shalt.err (!%p543_p0)
}
  0x20   :  { %s576_s1 = smov 512   ;;  %s577_s25 = smov 32  }
  0x21   :  { %42 = dma.hbm_to_vmem [thread:$0]  %s716_s2, 5120, %s37_s23, [#allocation6], %s576_s1, %s576_s1, %s577_s25  }
  0x22   :  { %567 = dma.done.wait [#allocation3], 512  }
  0x23   :  { %568 = vsyncadd [#allocation3], 4294966784 }
  0x24   :  { %569 = dma.done.wait [#allocation6], 5248  }
  0x25   :  { %570 = vsyncadd [#allocation6], 4294962048  ;;  %v617_v0 = vld [vmem:[#allocation2 + $0x10] sm:$0xff]  ;;  %v619_v1 = vld [vmem:[#allocation2] sm:$0xff]  ;;  %vm243_vm0 = vcmask 1040384   ;;  %s578_s0 = smov 111   ;;  %v64_v9 = vlaneseq }
  0x26   :  { %153 = vrot.lane.b32.xlu1 %v617_v0, %s578_s0  ;;  %149 = vrot.lane.b32.xlu0 %v619_v1, %s578_s0  ;;  %v623_v2 = vld [vmem:[#allocation2 + $0x18] sm:$0xff]  ;;  %v625_v3 = vld [vmem:[#allocation2 + $0x8] sm:$0xff]  ;;  %v199_v4 = vld [vmem:[#allocation7 + $0x128] sm:$0x1]  ;;  %s579_s2 = smov 112   ;;  %s580_s28 = smov 113  }
  0x27   :  { %446 = vmatprep.subr.msk.mxu0 %vm243_vm0, %v199_v4  ;;  %v201_v5 = vld [vmem:[#allocation7 + $0x138] sm:$0x1]  ;;  %v198_v6 = vld [vmem:[#allocation7 + $0x120] sm:$0x1]  ;;  %v200_v7 = vld [vmem:[#allocation7 + $0x130] sm:$0x1] }
  0x28   :  { %449 = vmatprep.subr.msk.mxu1 %vm243_vm0, %v201_v5  ;;  %447 = vmatpush1.msk.msra.mxu0 %vm243_vm0, %v198_v6  ;;  %s581_s29 = smov 127   ;;  %s582_s30 = smov 1   ;;  %v585_v8 = vmov 0.0   ;;  %v657_v10 = vand.u32 127, %v64_v9  ;;  %v196_v13 = vld [vmem:[#allocation7 + $0x110] sm:$0xff]  ;;  %v197_v14 = vld [vmem:[#allocation7 + $0x118] sm:$0xff] }
  0x29   :  { %450 = vmatpush1.msk.msra.mxu1 %vm243_vm0, %v200_v7  ;;  %s583_s4 = smov 15   ;;  %s584_s5 = smov 16   ;;  %320 = vmatprep.mubr.f32.mxu0 %v585_v8  ;;  %v194_v15 = vld [vmem:[#allocation7 + $0x100] sm:$0xff]  ;;  %v195_v16 = vld [vmem:[#allocation7 + $0x108] sm:$0xff]  ;;  %v193_v29 = vld [vmem:[#allocation7 + $0xf8] sm:$0xff]  ;;  %vm239_vm9 = vcmask 596992  }
  0x2a   :  { %155 = vrot.lane.b32.xlu1 %v623_v2, %s578_s0  ;;  %151 = vrot.lane.b32.xlu0 %v625_v3, %s578_s0  ;;  %s586_s6 = smov 17   ;;  %vm157_vm1 = vcmp.lt.s32.totalorder %v657_v10, 111  ;;  %vm144_vm2 = vcmp.lt.s32.totalorder %v657_v10, 112  ;;  %v191_v30 = vld [vmem:[#allocation7 + $0xe8] sm:$0xff]  ;;  %v192_v31 = vld [vmem:[#allocation7 + $0xf0] sm:$0xff]  ;;  %v190_v32 = vld [vmem:[#allocation7 + $0xe0] sm:$0xff] }
  0x2b   :  { %391 = vmatprep.mubr.f32.mxu1 %v585_v8  ;;  %vm131_vm3 = vcmp.lt.s32.totalorder %v657_v10, 113  ;;  %v189_v45 = vld [vmem:[#allocation7 + $0xd8] sm:$0xff]  ;;  %v187_v46 = vld [vmem:[#allocation7 + $0xc8] sm:$0xff]  ;;  %v188_v47 = vld [vmem:[#allocation7 + $0xd0] sm:$0xff]  ;;  %vm118_vm4 = vcmp.lt.s32.totalorder %v657_v10, 127  ;;  %vm105_vm5 = vcmp.lt.s32.totalorder %v657_v10, 1 }
  0x2c   :  { %v186_v48 = vld [vmem:[#allocation7 + $0xc0] sm:$0xff]  ;;  %v185_v61 = vld [vmem:[#allocation7 + $0xb8] sm:$0xff]  ;;  %v179_v62 = vld [vmem:[#allocation7 + $0x88] sm:$0xff]  ;;  %vm92_vm6 = vcmp.lt.s32.totalorder %v657_v10, 15  ;;  %vm79_vm7 = vcmp.lt.s32.totalorder %v657_v10, 16  ;;  %vm66_vm8 = vcmp.lt.s32.totalorder %v657_v10, 17 }
  0x2d   :  { %v183_v63 = vld [vmem:[#allocation7 + $0xa8] sm:$0xff]  ;;  %v184_v4 = vld [vmem:[#allocation7 + $0xb0] sm:$0xff]  ;;  %v181_v5 = vld [vmem:[#allocation7 + $0x98] sm:$0xff]  ;;  %s587_s7 = smov [#allocation8]  }
  0x2e   :  { %138 = vrot.lane.b32.xlu1 %v625_v3, %s579_s2  ;;  %136 = vrot.lane.b32.xlu0 %v619_v1, %s579_s2  ;;  %v182_v6 = vld [vmem:[#allocation7 + $0xa0] sm:$0xff]  ;;  %s436_s8 = sshll.u32 %s587_s7, 4  ;;  %s437_s8 = int_to_ptr.vmem [resolvable:$true] %s436_s8 }
  0x2f   :  { %s547_s9 = scalar_lea.vmem %s437_s8, 512  ;;  %p552_p2 = scmp.lt.s32.totalorder %s437_s8, %s437_s8 }
  0x30   :  { %p548_p1 = scmp.ne.s32.totalorder %s437_s8, %s547_s9  ;;  %p553_p3 = scmp.lt.s32.totalorder %s547_s9, %s547_s9 }
  0x32   :  { %142 = vrot.lane.b32.xlu1 %v623_v2, %s579_s2  ;;  %140 = vrot.lane.b32.xlu0 %v617_v0, %s579_s2  ;;  %p554_p4 = por %p553_p3, %p552_p2 }
  0x34   :  { %p555_p5 = pnand %p554_p4, %p548_p1 }
  0x36   :  { %125 = vrot.lane.b32.xlu1 %v625_v3, %s580_s28  ;;  %123 = vrot.lane.b32.xlu0 %v619_v1, %s580_s28 }
  0x3a   :  { %129 = vrot.lane.b32.xlu1 %v623_v2, %s580_s28  ;;  %127 = vrot.lane.b32.xlu0 %v617_v0, %s580_s28 }
  0x3e   :  { %112 = vrot.lane.b32.xlu1 %v625_v3, %s581_s29  ;;  %110 = vrot.lane.b32.xlu0 %v619_v1, %s581_s29 }
  0x42   :  { %116 = vrot.lane.b32.xlu1 %v623_v2, %s581_s29  ;;  %114 = vrot.lane.b32.xlu0 %v617_v0, %s581_s29 }
  0x46   :  { %99 = vrot.lane.b32.xlu1 %v625_v3, %s582_s30  ;;  %97 = vrot.lane.b32.xlu0 %v619_v1, %s582_s30 }
  0x4a   :  { %103 = vrot.lane.b32.xlu1 %v623_v2, %s582_s30  ;;  %101 = vrot.lane.b32.xlu0 %v617_v0, %s582_s30 }
  0x4e   :  { %86 = vrot.lane.b32.xlu1 %v625_v3, %s583_s4  ;;  %84 = vrot.lane.b32.xlu0 %v619_v1, %s583_s4 }
  0x52   :  { %90 = vrot.lane.b32.xlu1 %v623_v2, %s583_s4  ;;  %88 = vrot.lane.b32.xlu0 %v617_v0, %s583_s4 }
  0x56   :  { %73 = vrot.lane.b32.xlu1 %v625_v3, %s584_s5  ;;  %71 = vrot.lane.b32.xlu0 %v619_v1, %s584_s5 }
  0x5a   :  { %77 = vrot.lane.b32.xlu1 %v623_v2, %s584_s5  ;;  %75 = vrot.lane.b32.xlu0 %v617_v0, %s584_s5 }
  0x5e   :  { %58 = vrot.lane.b32.xlu1 %v625_v3, %s586_s6  ;;  %56 = vrot.lane.b32.xlu0 %v619_v1, %s586_s6 }
  0x62   :  { %62 = vrot.lane.b32.xlu1 %v623_v2, %s586_s6  ;;  %60 = vrot.lane.b32.xlu0 %v617_v0, %s586_s6 }
  0x98   :  { %v154_v11 = vpop.permute.xlu1 %153  ;;  %v150_v12 = vpop.permute.xlu0 %149 }
  0x9c   :  { %v156_v17 = vpop.permute.xlu1 %155  ;;  %v152_v18 = vpop.permute.xlu0 %151 }
  0x9d   :  { %v158_v19 = vsel %vm157_vm1, %v154_v11, %v156_v17  ;;  %v161_v20 = vsel %vm157_vm1, %v156_v17, %v150_v12  ;;  %v159_v21 = vsel %vm157_vm1, %v152_v18, %v154_v11  ;;  %v160_v22 = vsel %vm157_vm1, %v150_v12, %v152_v18  ;;  %v178_v11 = vld [vmem:[#allocation7 + $0x80] sm:$0xff]  ;;  %v180_v12 = vld [vmem:[#allocation7 + $0x90] sm:$0xff] }
  0x9e   :  { %v236_v23 = vmul.f32 %v196_v13, %v158_v19  ;;  %v237_v24 = vmul.f32 %v197_v14, %v161_v20  ;;  %v234_v25 = vmul.f32 %v194_v15, %v160_v22  ;;  %v235_v26 = vmul.f32 %v195_v16, %v159_v21  ;;  %v175_v22 = vld [vmem:[#allocation7 + $0x68] sm:$0xff] }
  0x9f   :  { %v219_v16 = vmul.f32 %v179_v62, %v625_v3  ;;  %v221_v20 = vmul.f32 %v181_v5, %v623_v2  ;;  %v174_v2 = vld [vmem:[#allocation7 + $0x60] sm:$0xff] }
  0xa0   :  { %v139_v27 = vpop.permute.xlu1 %138  ;;  %270 = vmatprep.subr.mxu0 %v235_v26  ;;  %341 = vmatprep.subr.mxu1 %v237_v24  ;;  %v137_v28 = vpop.permute.xlu0 %136  ;;  %v220_v24 = vmul.f32 %v180_v12, %v617_v0 }
  0xa1   :  { %271 = vmatpush1.msra.mxu0 %v234_v25  ;;  %342 = vmatpush1.msra.mxu1 %v236_v23  ;;  %v147_v33 = vsel %vm144_vm2, %v137_v28, %v139_v27  ;;  %v218_v23 = vmul.f32 %v178_v11, %v619_v1 }
  0xa2   :  { %v230_v42 = vmul.f32 %v190_v32, %v147_v33 }
  0xa4   :  { %v143_v34 = vpop.permute.xlu1 %142  ;;  %v141_v35 = vpop.permute.xlu0 %140 }
  0xa5   :  { %v148_v36 = vsel %vm144_vm2, %v143_v34, %v137_v28  ;;  %v145_v37 = vsel %vm144_vm2, %v141_v35, %v143_v34  ;;  %v146_v38 = vsel %vm144_vm2, %v139_v27, %v141_v35  ;;  %v176_v28 = vld [vmem:[#allocation7 + $0x70] sm:$0xff] }
  0xa6   :  { %v233_v39 = vmul.f32 %v193_v29, %v148_v36  ;;  %v231_v40 = vmul.f32 %v191_v30, %v146_v38  ;;  %v232_v41 = vmul.f32 %v192_v31, %v145_v37  ;;  %v177_v29 = vld [vmem:[#allocation7 + $0x78] sm:$0xff]  ;;  %v171_v36 = vld [vmem:[#allocation7 + $0x48] sm:$0xff] }
  0xa8   :  { %v126_v43 = vpop.permute.xlu1 %125  ;;  %272 = vmatprep.subr.mxu0 %v231_v40  ;;  %343 = vmatprep.subr.mxu1 %v233_v39  ;;  %v124_v44 = vpop.permute.xlu0 %123 }
  0xa9   :  { %273 = vmatpush1.msra.mxu0 %v230_v42  ;;  %344 = vmatpush1.msra.mxu1 %v232_v41  ;;  %v134_v49 = vsel %vm131_vm3, %v124_v44, %v126_v43  ;;  %v170_v41 = vld [vmem:[#allocation7 + $0x40] sm:$0xff]  ;;  %v172_v42 = vld [vmem:[#allocation7 + $0x50] sm:$0xff] }
  0xaa   :  { %v226_v58 = vmul.f32 %v186_v48, %v134_v49 }
  0xac   :  { %v130_v50 = vpop.permute.xlu1 %129  ;;  %v128_v51 = vpop.permute.xlu0 %127 }
  0xad   :  { %v135_v52 = vsel %vm131_vm3, %v130_v50, %v124_v44  ;;  %v132_v53 = vsel %vm131_vm3, %v128_v51, %v130_v50  ;;  %v133_v54 = vsel %vm131_vm3, %v126_v43, %v128_v51  ;;  %v173_v43 = vld [vmem:[#allocation7 + $0x58] sm:$0xff] }
  0xae   :  { %v229_v55 = vmul.f32 %v189_v45, %v135_v52  ;;  %v227_v56 = vmul.f32 %v187_v46, %v133_v54  ;;  %v228_v57 = vmul.f32 %v188_v47, %v132_v53  ;;  %v167_v52 = vld [vmem:[#allocation7 + $0x28] sm:$0xff] }
  0xb0   :  { %v113_v59 = vpop.permute.xlu1 %112  ;;  %274 = vmatprep.subr.mxu0 %v227_v56  ;;  %345 = vmatprep.subr.mxu1 %v229_v55  ;;  %v111_v60 = vpop.permute.xlu0 %110 }
  0xb1   :  { %275 = vmatpush1.msra.mxu0 %v226_v58  ;;  %346 = vmatpush1.msra.mxu1 %v228_v57  ;;  %v121_v7 = vsel %vm118_vm4, %v111_v60, %v113_v59  ;;  %v166_v57 = vld [vmem:[#allocation7 + $0x20] sm:$0xff]  ;;  %v168_v58 = vld [vmem:[#allocation7 + $0x30] sm:$0xff] }
  0xb2   :  { %v222_v21 = vmul.f32 %v182_v6, %v121_v7 }
  0xb4   :  { %v117_v8 = vpop.permute.xlu1 %116  ;;  %v115_v9 = vpop.permute.xlu0 %114 }
  0xb5   :  { %v122_v13 = vsel %vm118_vm4, %v117_v8, %v111_v60  ;;  %v119_v14 = vsel %vm118_vm4, %v115_v9, %v117_v8  ;;  %v120_v15 = vsel %vm118_vm4, %v113_v59, %v115_v9  ;;  %v169_v59 = vld [vmem:[#allocation7 + $0x38] sm:$0xff]  ;;  %v163_v8 = vld [vmem:[#allocation7 + $0x8] sm:$0xff] }
  0xb6   :  { %v225_v17 = vmul.f32 %v185_v61, %v122_v13  ;;  %v223_v18 = vmul.f32 %v183_v63, %v120_v15  ;;  %v224_v19 = vmul.f32 %v184_v4, %v119_v14  ;;  %v162_v14 = vld [vmem:[#allocation7] sm:$0xff]  ;;  %v164_v15 = vld [vmem:[#allocation7 + $0x10] sm:$0xff] }
  0xb8   :  { %v100_v25 = vpop.permute.xlu1 %99  ;;  %276 = vmatprep.subr.mxu0 %v223_v18  ;;  %347 = vmatprep.subr.mxu1 %v225_v17  ;;  %v98_v26 = vpop.permute.xlu0 %97 }
  0xb9   :  { %v108_v27 = vsel %vm105_vm5, %v98_v26, %v100_v25  ;;  %277 = vmatpush1.msra.mxu0 %v222_v21  ;;  %348 = vmatpush1.msra.mxu1 %v224_v19 }
  0xba   :  { %v215_v3 = vmul.f32 %v175_v22, %v108_v27  ;;  %278 = vmatprep.subr.mxu0 %v219_v16  ;;  %349 = vmatprep.subr.mxu1 %v221_v20  ;;  %v165_v16 = vld [vmem:[#allocation7 + $0x18] sm:$0xff] }
  0xbb   :  { %279 = vmatpush1.msra.mxu0 %v218_v23  ;;  %350 = vmatpush1.msra.mxu1 %v220_v24 }
  0xbc   :  { %v104_v1 = vpop.permute.xlu1 %103  ;;  %v102_v30 = vpop.permute.xlu0 %101  ;;  %280 = vmatprep.subr.mxu0 %v215_v3 }
  0xbd   :  { %v109_v0 = vsel %vm105_vm5, %v104_v1, %v98_v26  ;;  %v106_v31 = vsel %vm105_vm5, %v102_v30, %v104_v1  ;;  %v107_v32 = vsel %vm105_vm5, %v100_v25, %v102_v30  ;;  %v238_v25 = vld [vmem:[#allocation5] sm:$0xff] }
  0xbe   :  { %v214_v33 = vmul.f32 %v174_v2, %v109_v0  ;;  %v216_v34 = vmul.f32 %v176_v28, %v107_v32  ;;  %v217_v35 = vmul.f32 %v177_v29, %v106_v31 }
  0xc0   :  { %v87_v37 = vpop.permute.xlu1 %86  ;;  %351 = vmatprep.subr.mxu1 %v217_v35  ;;  %v85_v38 = vpop.permute.xlu0 %84  ;;  %281 = vmatpush1.msra.mxu0 %v214_v33 }
  0xc1   :  { %v95_v39 = vsel %vm92_vm6, %v85_v38, %v87_v37  ;;  %352 = vmatpush1.msra.mxu1 %v216_v34 }
  0xc2   :  { %v211_v40 = vmul.f32 %v171_v36, %v95_v39 }
  0xc4   :  { %v91_v44 = vpop.permute.xlu1 %90  ;;  %v89_v45 = vpop.permute.xlu0 %88  ;;  %282 = vmatprep.subr.mxu0 %v211_v40 }
  0xc5   :  { %v96_v46 = vsel %vm92_vm6, %v91_v44, %v85_v38  ;;  %v93_v47 = vsel %vm92_vm6, %v89_v45, %v91_v44  ;;  %v94_v48 = vsel %vm92_vm6, %v87_v37, %v89_v45 }
  0xc6   :  { %v210_v49 = vmul.f32 %v170_v41, %v96_v46  ;;  %v212_v50 = vmul.f32 %v172_v42, %v94_v48  ;;  %v213_v51 = vmul.f32 %v173_v43, %v93_v47 }
  0xc8   :  { %v74_v53 = vpop.permute.xlu1 %73  ;;  %353 = vmatprep.subr.mxu1 %v213_v51  ;;  %v72_v54 = vpop.permute.xlu0 %71  ;;  %283 = vmatpush1.msra.mxu0 %v210_v49 }
  0xc9   :  { %v82_v55 = vsel %vm79_vm7, %v72_v54, %v74_v53  ;;  %354 = vmatpush1.msra.mxu1 %v212_v50 }
  0xca   :  { %v207_v56 = vmul.f32 %v167_v52, %v82_v55 }
  0xcc   :  { %v78_v60 = vpop.permute.xlu1 %77  ;;  %v76_v61 = vpop.permute.xlu0 %75  ;;  %284 = vmatprep.subr.mxu0 %v207_v56 }
  0xcd   :  { %v83_v62 = vsel %vm79_vm7, %v78_v60, %v72_v54  ;;  %v80_v63 = vsel %vm79_vm7, %v76_v61, %v78_v60  ;;  %v81_v4 = vsel %vm79_vm7, %v74_v53, %v76_v61 }
  0xce   :  { %v206_v5 = vmul.f32 %v166_v57, %v83_v62  ;;  %v208_v6 = vmul.f32 %v168_v58, %v81_v4  ;;  %v209_v7 = vmul.f32 %v169_v59, %v80_v63 }
  0xd0   :  { %v59_v9 = vpop.permute.xlu1 %58  ;;  %355 = vmatprep.subr.mxu1 %v209_v7  ;;  %v57_v11 = vpop.permute.xlu0 %56  ;;  %285 = vmatpush1.msra.mxu0 %v206_v5 }
  0xd1   :  { %v69_v12 = vsel %vm66_vm8, %v57_v11, %v59_v9  ;;  %356 = vmatpush1.msra.mxu1 %v208_v6 }
  0xd2   :  { %v203_v13 = vmul.f32 %v163_v8, %v69_v12 }
  0xd4   :  { %v63_v17 = vpop.permute.xlu1 %62  ;;  %v61_v18 = vpop.permute.xlu0 %60  ;;  %286 = vmatprep.subr.mxu0 %v203_v13 }
  0xd5   :  { %v70_v19 = vsel %vm66_vm8, %v63_v17, %v57_v11  ;;  %v67_v20 = vsel %vm66_vm8, %v61_v18, %v63_v17  ;;  %v68_v21 = vsel %vm66_vm8, %v59_v9, %v61_v18 }
  0xd6   :  { %v202_v22 = vmul.f32 %v162_v14, %v70_v19  ;;  %v204_v23 = vmul.f32 %v164_v15, %v68_v21  ;;  %v205_v24 = vmul.f32 %v165_v16, %v67_v20 }
  0xd8   :  { %287 = vmatpush1.msra.mxu0 %v202_v22  ;;  %357 = vmatprep.subr.mxu1 %v205_v24 }
  0xd9   :  { %448 = vmatmul.mubr.msk.f32.vlgmr.msra.gmra.mxu0 %vm239_vm9, %v238_v25  ;;  %358 = vmatpush1.msra.mxu1 %v204_v23 }
  0xda   :  { %451 = vmatmul.mubr.msk.f32.vlgmr.msra.gmra.mxu1 %vm239_vm9, %v238_v25 }
 0x199   :  { %v322_v26 = vpop.f32.mrf.mxu0 }
 0x19a   :  { %v452_v27 = vmul.f32 -1.442695, %v322_v26  ;;  %v393_v3 = vpop.f32.mrf.mxu1 }
 0x19b   :  { %v454_v2 = vmul.f32 -1.442695, %v393_v3  ;;  %v324_v28 = vpop.f32.mrf.mxu0 }
 0x19c   :  { %471 = vpow2.f32 %v452_v27  ;;  %v453_v29 = vmul.f32 -1.442695, %v324_v28  ;;  %v395_v1 = vpop.f32.mrf.mxu1 }
 0x19d   :  { %473 = vpow2.f32 %v454_v2  ;;  %v455_v10 = vmul.f32 -1.442695, %v395_v1 }
 0x19e   :  { %475 = vpow2.f32 %v453_v29 }
 0x19f   :  { %477 = vpow2.f32 %v455_v10 }
 0x1a9   :  { %v472_v30 = vpop.eup %471 }
 0x1aa   :  { %v474_v0 = vpop.eup %473  ;;  %v410_v31 = vadd.f32 1.0, %v472_v30 }
 0x1ab   :  { %v476_v32 = vpop.eup %475  ;;  %v412_v33 = vadd.f32 1.0, %v474_v0 }
 0x1ac   :  { %v478_v34 = vpop.eup %477  ;;  %479 = vrcp.f32 %v410_v31  ;;  %v411_v35 = vadd.f32 1.0, %v476_v32 }
 0x1ad   :  { %481 = vrcp.f32 %v412_v33  ;;  %v413_v36 = vadd.f32 1.0, %v478_v34 }
 0x1ae   :  { %483 = vrcp.f32 %v411_v35 }
 0x1af   :  { %485 = vrcp.f32 %v413_v36 }
 0x1b9   :  { %v480_v37 = vpop.eup %479 }
 0x1ba   :  { %v482_v38 = vpop.eup %481  ;;  %v422_v39 = vmul.f32 %v480_v37, %v322_v26 }
 0x1bb   :  { %v484_v40 = vpop.eup %483  ;;  %v424_v41 = vmul.f32 %v482_v38, %v393_v3 }
 0x1bc   :  { %v486_v42 = vpop.eup %485  ;;  %426 = vst [vmem:[#allocation8] sm:$0xff] %v422_v39  ;;  %v423_v43 = vmul.f32 %v484_v40, %v324_v28 }
 0x1bd   :  { %428 = vst [vmem:[#allocation8 + $0x10] sm:$0xff] %v424_v41  ;;  %v425_v44 = vmul.f32 %v486_v42, %v395_v1 }
 0x1be   :  { %427 = vst [vmem:[#allocation8 + $0x8] sm:$0xff] %v423_v43 }
 0x1bf   :  { %429 = vst [vmem:[#allocation8 + $0x18] sm:$0xff] %v425_v44 }
 0x1c0   :  { %558 = shalt.err (!%p555_p5)
}
 0x1c1   :  { %439 = dma.vmem_to_hbm [thread:$0]  %s437_s8, 512, %s717_s3, [#allocation4]  }
 0x1c2   :  { %571 = dma.done.wait [#allocation4], 512  }
 0x1c3   :  { %572 = vsyncadd [#allocation4], 4294966784 }
 0x1c4   :  { %443 = vsyncpa [#allocation3], 1 }
 0x1c5   :  { %444 = vsyncpa [#allocation6], 1 }
 0x1c6   :  { %445 = vsyncpa [#allocation4], 1 }

</bundles_post_ra>
